<compile_context>
chip_gen: v6e
topology: v6e:2x2x1
jax: 0.10.0
libtpu: 0.0.40
codegen_flags: <defaults>
</compile_context>

<pallas_src>
import functools

import jax
import jax.numpy as jnp
from jax import lax
from jax.experimental import pallas as pl
from jax.experimental.pallas import tpu as pltpu

LANES = 128


def _pow_gamma(d, gamma):
    """(1 - pt) ** gamma with an integer fast path (avoids log+exp pow on EUP)."""
    g = float(gamma)
    if g.is_integer() and 0.0 <= g <= 8.0:
        gi = int(g)
        if gi == 0:
            return jnp.ones_like(d)
        out = d
        for _ in range(gi - 1):
            out = out * d
        return out
    return d ** g  # non-integer gamma: fall back to pow (matches reference)


def _focal_elem(x, t, gamma):
    """Per-element focal term (1-pt)^gamma * bce in f32 (alpha, 1/N folded later)."""
    x = x.astype(jnp.float32)
    t = t.astype(jnp.float32)
    # Numerically stable BCE-with-logits (matches F.binary_cross_entropy_with_logits):
    #   bce = max(x, 0) - x*t + log1p(exp(-|x|))
    bce = jnp.maximum(x, 0.0) - x * t + jnp.log1p(jnp.exp(-jnp.abs(x)))
    pt = jnp.exp(-bce)
    return _pow_gamma(1.0 - pt, gamma) * bce


def _focal_loss_kernel(x_ref, t_ref, out_ref, *,
                       gamma, chunk_rows, num_chunks, tail_valid, last_idx,
                       full_block):
    i = pl.program_id(0)

    def run(masked):
        def body(c, acc):
            base = pl.multiple_of(c * chunk_rows, chunk_rows)
            x = x_ref[pl.ds(base, chunk_rows), :]
            t = t_ref[pl.ds(base, chunk_rows), :]
            f = _focal_elem(x, t, gamma)
            if masked:
                # Only the ragged last block takes this path.  Mask BEFORE the
                # sum so garbage/NaN from the partial DMA never reaches acc.
                r = lax.broadcasted_iota(jnp.int32, f.shape, 0)
                cc = lax.broadcasted_iota(jnp.int32, f.shape, 1)
                idx = (base + r) * LANES + cc
                f = jnp.where(idx < tail_valid, f, 0.0)
            return acc + jnp.sum(f, axis=0, keepdims=True)

        acc0 = jnp.zeros((1, LANES), jnp.float32)
        return lax.fori_loop(0, num_chunks, body, acc0)

    if tail_valid < full_block:
        # Grid has a row-ragged last block: emit the masked path only for it.
        @pl.when(i == last_idx)
        def _():
            out_ref[0] = run(True)

        @pl.when(i != last_idx)
        def _():
            out_ref[0] = run(False)
    else:
        out_ref[0] = run(False)


def focal_loss(inputs, targets, alpha=0.25, gamma=2.0,
               block_rows=8192, chunk_rows=512):
    """Pallas TPU focal loss. Returns a scalar (float32), mean over all elems."""
    assert inputs.shape == targets.shape
    n = int(inputs.size)
    assert n > 0

    # Flatten in the ORIGINAL dtype (no host astype pass, no pad copy).
    x = inputs.reshape(-1)
    t = targets.reshape(-1)

    rows = n // LANES          # lane-aligned prefix handled by the kernel
    rem = n - rows * LANES     # < 128 leftover elements: plain jnp in the finalize

    total = jnp.zeros((), jnp.float32)

    if rows > 0:
        if rem:
            x2 = x[: rows * LANES].reshape(rows, LANES)
            t2 = t[: rows * LANES].reshape(rows, LANES)
        else:
            x2 = x.reshape(rows, LANES)
            t2 = t.reshape(rows, LANES)

        # ---- tile selection --------------------------------------------------
        chunk_rows = max(16, (int(chunk_rows) // 16) * 16)        # f32/bf16 legal
        block_rows = max(chunk_rows, (int(block_rows) // chunk_rows) * chunk_rows)

        if rows <= chunk_rows:
            # Tiny input: one block == full array (legal for any row count),
            # one compute chunk.
            block_rows = rows
            chunk_rows = rows
        elif rows <= 2 * block_rows:
            # Medium input: ~2 balanced blocks so both TensorCores are fed on
            # v7x (no-op on single-TC v5e/v6e).  Blocks stay chunk multiples.
            block_rows = chunk_rows * pl.cdiv(pl.cdiv(rows, 2), chunk_rows)
        # else: large input, keep the big (roofline-friendly) block_rows.

        num_blocks = pl.cdiv(rows, block_rows)
        last_idx = num_blocks - 1
        num_chunks = block_rows // chunk_rows
        full_block = block_rows * LANES
        tail_valid = rows * LANES - last_idx * full_block   # valid elems, last block

        kernel = functools.partial(
            _focal_loss_kernel,
            gamma=float(gamma),
            chunk_rows=int(chunk_rows),
            num_chunks=int(num_chunks),
            tail_valid=int(tail_valid),
            last_idx=int(last_idx),
            full_block=int(full_block),
        )

        # Scoped-VMEM limit: raise when the double-buffered inputs get big, with
        # generous slack for output buffers / compiler scratch; never lowered
        # below the 32 MiB v6e/v7x default and capped well under v7x's 64 MiB.
        in_block_bytes = block_rows * LANES * (x2.dtype.itemsize + t2.dtype.itemsize)
        working = 2 * in_block_bytes + (8 << 20)
        vmem_limit = min(max(working, 32 << 20), 48 << 20) if working > (12 << 20) else None

        partials = pl.pallas_call(
            kernel,
            out_shape=jax.ShapeDtypeStruct((num_blocks, 1, LANES), jnp.float32),
            grid_spec=pltpu.PrefetchScalarGridSpec(
                num_scalar_prefetch=0,
                grid=(num_blocks,),
                in_specs=[
                    pl.BlockSpec((block_rows, LANES), lambda i: (i, 0)),
                    pl.BlockSpec((block_rows, LANES), lambda i: (i, 0)),
                ],
                out_specs=pl.BlockSpec((1, 1, LANES), lambda i: (i, 0, 0)),
            ),
            compiler_params=pltpu.CompilerParams(
                dimension_semantics=("parallel",),
                vmem_limit_bytes=vmem_limit,
            ),
        )(x2, t2)

        total = total + jnp.sum(partials)

    if rem:
        # <128 leftover elements: handled with plain jnp instead of paying a
        # full-array pad (extra HBM read+write of the whole input).
        total = total + jnp.sum(_focal_elem(x[rows * LANES:], t[rows * LANES:], gamma))

    # Tiny finalize: fold alpha and 1/N once (spec applies alpha uniformly).
    return total * (float(alpha) / n)


def focal_loss_ref(inputs, targets, alpha=0.25, gamma=2.0):
    x = inputs.astype(jnp.float32)
    t = targets.astype(jnp.float32)
    bce = jnp.maximum(x, 0.0) - x * t + jnp.log1p(jnp.exp(-jnp.abs(x)))
    pt = jnp.exp(-bce)
    return jnp.mean(alpha * (1.0 - pt) ** gamma * bce)


if __name__ == "__main__":
    key = jax.random.PRNGKey(0)
    k = jax.random.split(key, 6)

    # 1) Typical detection-head-like NCHW output (lane-aligned, single block).
    shape = (2, 4, 16, 16)
    inputs = jax.random.normal(k[0], shape, dtype=jnp.float32)
    targets = jax.random.bernoulli(k[1], p=0.3, shape=shape).astype(jnp.float32)
    loss = jax.block_until_ready(focal_loss(inputs, targets, alpha=0.25, gamma=2.0))
    ref = focal_loss_ref(inputs, targets, alpha=0.25, gamma=2.0)
    assert jnp.allclose(loss, ref, rtol=1e-5, atol=1e-6), (loss, ref)

    # 2) Lane-ragged size: kernel on the aligned prefix + jnp leftover path.
    shape2 = (5, 129)
    inputs2 = jax.random.normal(k[2], shape2, dtype=jnp.float32)
    targets2 = jax.random.bernoulli(k[3], p=0.3, shape=shape2).astype(jnp.float32)
    loss2 = jax.block_until_ready(focal_loss(inputs2, targets2, alpha=0.25, gamma=2.0))
    ref2 = focal_loss_ref(inputs2, targets2, alpha=0.25, gamma=2.0)
    assert jnp.allclose(loss2, ref2, rtol=1e-5, atol=1e-6), (loss2, ref2)

    # 3) Multi-block grid with a row-ragged last block + chunked inner loop.
    shape3 = (40, 160)
    inputs3 = jax.random.normal(k[4], shape3, dtype=jnp.float32)
    targets3 = jax.random.bernoulli(k[5], p=0.3, shape=shape3).astype(jnp.float32)
    loss3 = jax.block_until_ready(
        focal_loss(inputs3, targets3, alpha=0.25, gamma=2.0, block_rows=32, chunk_rows=16))
    ref3 = focal_loss_ref(inputs3, targets3, alpha=0.25, gamma=2.0)
    assert jnp.allclose(loss3, ref3, rtol=1e-5, atol=1e-6), (loss3, ref3)

    print("KERNEL_OK")
</pallas_src>

<mosaic_0001>
module attributes {stable_mosaic.version = 11 : i64} {
  func.func @_focal_loss_kernel(%arg0: i32, %arg1: memref<16x128xf32, #tpu.memory_space<vmem>>, %arg2: memref<16x128xf32, #tpu.memory_space<vmem>>, %arg3: memref<1x1x128xf32, #tpu.memory_space<vmem>>) attributes {dimension_semantics = [#tpu.dimension_semantics<parallel>], iteration_bounds = array<i64: 1>, scalar_prefetch = 0 : i64, scratch_operands = 0 : i64, tpu.core_type = #tpu.core_type<tc>, window_params = [{transform_indices = @transform_0, window_bounds = array<i64: 16, 128>}, {transform_indices = @transform_1, window_bounds = array<i64: 16, 128>}, {transform_indices = @transform_2, window_bounds = array<i64: 1, 1, 128>}]} {
    %cst = arith.constant 0.000000e+00 : f32
    %0 = vector.broadcast %cst : f32 to vector<1x128xf32>
    %c0_i32 = arith.constant 0 : i32
    %c16_i32 = arith.constant 16 : i32
    %1 = arith.muli %c0_i32, %c16_i32 : i32
    %2 = tpu.assume_multiple %1, 16 : i32
    %3 = arith.index_cast %2 : i32 to index
    %c0 = arith.constant 0 : index
    %4 = vector.load %arg1[%3, %c0] : memref<16x128xf32, #tpu.memory_space<vmem>>, vector<16x128xf32>
    %5 = arith.index_cast %2 : i32 to index
    %c0_0 = arith.constant 0 : index
    %6 = vector.load %arg2[%5, %c0_0] : memref<16x128xf32, #tpu.memory_space<vmem>>, vector<16x128xf32>
    %cst_1 = arith.constant 0.000000e+00 : f32
    %7 = vector.broadcast %cst_1 : f32 to vector<16x128xf32>
    %8 = arith.maximumf %4, %7 : vector<16x128xf32>
    %9 = arith.mulf %4, %6 : vector<16x128xf32>
    %10 = arith.subf %8, %9 : vector<16x128xf32>
    %11 = math.absf %4 : vector<16x128xf32>
    %cst_2 = arith.constant 0.000000e+00 : f32
    %12 = vector.broadcast %cst_2 : f32 to vector<16x128xf32>
    %13 = arith.subf %12, %11 : vector<16x128xf32>
    %14 = math.exp %13 : vector<16x128xf32>
    %15 = math.log1p %14 : vector<16x128xf32>
    %16 = arith.addf %10, %15 : vector<16x128xf32>
    %cst_3 = arith.constant 0.000000e+00 : f32
    %17 = vector.broadcast %cst_3 : f32 to vector<16x128xf32>
    %18 = arith.subf %17, %16 : vector<16x128xf32>
    %19 = math.exp %18 : vector<16x128xf32>
    %cst_4 = arith.constant 1.000000e+00 : f32
    %20 = vector.broadcast %cst_4 : f32 to vector<16x128xf32>
    %21 = arith.subf %20, %19 : vector<16x128xf32>
    %22 = arith.mulf %21, %21 : vector<16x128xf32>
    %23 = arith.mulf %22, %16 : vector<16x128xf32>
    %cst_5 = arith.constant dense<0.000000e+00> : vector<128xf32>
    %24 = vector.multi_reduction <add>, %23, %cst_5 [0] : vector<16x128xf32> to vector<128xf32>
    %25 = vector.shape_cast %24 : vector<128xf32> to vector<1x128xf32>
    %26 = arith.addf %0, %25 : vector<1x128xf32>
    %c1_i32 = arith.constant 1 : i32
    %c0_6 = arith.constant 0 : index
    %c0_7 = arith.constant 0 : index
    %c0_8 = arith.constant 0 : index
    %27 = vector.load %arg3[%c0_6, %c0_7, %c0_8] : memref<1x1x128xf32, #tpu.memory_space<vmem>>, vector<1x1x128xf32>
    %28 = vector.shape_cast %27 : vector<1x1x128xf32> to vector<1x128xf32>
    %29 = vector.shape_cast %26 : vector<1x128xf32> to vector<1x1x128xf32>
    tpu.vector_store %arg3[%c0_6, %c0_7, %c0_8], %29 {strides = array<i32>} : memref<1x1x128xf32, #tpu.memory_space<vmem>>, vector<1x1x128xf32>,
    return
  }
  func.func @transform_0(%arg0: i32) -> (i32, i32) {
    %c0_i32 = arith.constant 0 : i32
    %c0_i32_0 = arith.constant 0 : i32
    return %arg0, %c0_i32 : i32, i32
  }
  func.func @transform_1(%arg0: i32) -> (i32, i32) {
    %c0_i32 = arith.constant 0 : i32
    %c0_i32_0 = arith.constant 0 : i32
    return %arg0, %c0_i32 : i32, i32
  }
  func.func @transform_2(%arg0: i32) -> (i32, i32, i32) {
    %c0_i32 = arith.constant 0 : i32
    %c0_i32_0 = arith.constant 0 : i32
    %c0_i32_1 = arith.constant 0 : i32
    return %arg0, %c0_i32, %c0_i32_0 : i32, i32, i32
  }
}

</mosaic_0001>

<bundles_post_ra>
// kernel: tpu_custom_call.1
= control target key start
LH: loop header
LB: loop body
LE: loop exit
PB: predicated region body
PF: predicated region fallthrough
CT: control target
= control target key end

     0   :  { %7 = vsyncpa [#allocation3], 0  ;;  %s227_s0 = inlined_call_operand.hbm [shape: f32[16,128], index: 0, kind: input, shape index: {}]   ;;  %s228_s1 = inlined_call_operand.hbm [shape: f32[16,128], index: 1, kind: input, shape index: {}]   ;;  %s229_s2 = inlined_call_operand.hbm [shape: f32[1,1,128], index: 2, kind: output, shape index: {}]  }
   0x1   :  { %8 = vsyncpa [#allocation6], 0 }
   0x2   :  { %9 = vsyncpa [#allocation4], 0  ;;  %s198_s9 = smov [#allocation2]  }
   0x3   :  { %s15_s10 = sshll.u32 %s198_s9, 4  ;;  %s16_s10 = int_to_ptr.vmem [resolvable:$true] %s15_s10 }
   0x4   :  { %s140_s11 = scalar_lea.vmem %s16_s10, 256  ;;  %p145_p1 = scmp.lt.s32.totalorder %s16_s10, %s16_s10 }
   0x5   :  { %p141_p0 = scmp.ne.s32.totalorder %s16_s10, %s140_s11  ;;  %p146_p2 = scmp.lt.s32.totalorder %s140_s11, %s140_s11 }
   0x7   :  { %p147_p3 = por %p146_p2, %p145_p1 }
   0x9   :  { %p148_p4 = pnand %p147_p3, %p141_p0 }
   0xb   :  { %151 = shalt.err (!%p148_p4)
}
   0xc   :  { %s199_s12 = smov 128   ;;  %s200_s13 = smov 8  }
   0xd   :  { %21 = dma.hbm_to_vmem [thread:$0]  %s227_s0, 256, %s16_s10, [#allocation3], %s199_s12, %s199_s12, %s200_s13  }
   0xe   :  { %s201_s16 = smov [#allocation5]  }
   0xf   :  { %s27_s17 = sshll.u32 %s201_s16, 4  ;;  %s28_s17 = int_to_ptr.vmem [resolvable:$true] %s27_s17 }
  0x10   :  { %s160_s18 = scalar_lea.vmem %s28_s17, 256  ;;  %p165_p6 = scmp.lt.s32.totalorder %s28_s17, %s28_s17 }
  0x11   :  { %p161_p5 = scmp.ne.s32.totalorder %s28_s17, %s160_s18  ;;  %p166_p7 = scmp.lt.s32.totalorder %s160_s18, %s160_s18 }
  0x13   :  { %p167_p8 = por %p166_p7, %p165_p6 }
  0x15   :  { %p168_p9 = pnand %p167_p8, %p161_p5 }
  0x17   :  { %171 = shalt.err (!%p168_p9)
}
  0x18   :  { %33 = dma.hbm_to_vmem [thread:$0]  %s228_s1, 256, %s28_s17, [#allocation6], %s199_s12, %s199_s12, %s200_s13  }
  0x19   :  { %192 = dma.done.wait [#allocation3], 256  }
  0x1a   :  { %193 = vsyncadd [#allocation3], 4294967040 }
  0x1b   :  { %194 = dma.done.wait [#allocation6], 256  }
  0x1c   :  { %195 = vsyncadd [#allocation6], 4294967040  ;;  %v40_v0 = vld [vmem:[#allocation2] sm:$0xff]  ;;  %v41_v1 = vld [vmem:[#allocation2 + $0x8] sm:$0xff]  ;;  %s202_s0 = smov [#allocation7]  }
  0x1d   :  { %v50_v2 = vand.u32 2147483647, %v40_v0  ;;  %v51_v3 = vand.u32 2147483647, %v41_v1  ;;  %v42_v14 = vld [vmem:[#allocation5] sm:$0xff]  ;;  %v43_v15 = vld [vmem:[#allocation5 + $0x8] sm:$0xff] }
  0x1e   :  { %v44_v17 = vmax.f32 %v40_v0, 0.0  ;;  %v46_v18 = vmul.f32 %v42_v14, %v40_v0  ;;  %v45_v21 = vmax.f32 %v41_v1, 0.0  ;;  %v47_v22 = vmul.f32 %v43_v15, %v41_v1  ;;  %s105_s1 = sshll.u32 %s202_s0, 4  ;;  %s106_s1 = int_to_ptr.vmem [resolvable:$true] %s105_s1 }
  0x1f   :  { %v52_v4 = vsub.f32 0.0, %v50_v2  ;;  %v53_v5 = vsub.f32 0.0, %v51_v3  ;;  %s172_s21 = scalar_lea.vmem %s106_s1, 16  ;;  %s176_s22 = scalar_lea.vmem %s106_s1, 32 }
  0x20   :  { %v48_v26 = vsub.f32 %v44_v17, %v46_v18  ;;  %v49_v29 = vsub.f32 %v45_v21, %v47_v22  ;;  %p173_p10 = scmp.ne.s32.totalorder %s106_s1, %s172_s21  ;;  %p177_p11 = scmp.lt.s32.totalorder %s106_s1, %s106_s1 }
  0x21   :  { %v54_v6 = vmul.f32 1.442695, %v52_v4  ;;  %v56_v7 = vmul.f32 1.442695, %v53_v5  ;;  %p178_p12 = scmp.lt.s32.totalorder %s176_s22, %s172_s21 }
  0x23   :  { %120 = vpow2.f32 %v54_v6  ;;  %p179_p13 = por %p178_p12, %p177_p11 }
  0x24   :  { %122 = vpow2.f32 %v56_v7 }
  0x25   :  { %p180_p0 = pnand %p179_p13, %p173_p10 }
  0x30   :  { %v121_v8 = vpop.eup %120 }
  0x31   :  { %v123_v9 = vpop.eup %122  ;;  %v58_v10 = vadd.f32 1.0, %v121_v8  ;;  %v61_v12 = vmul.f32 -0.5, %v121_v8  ;;  %v64_v19 = vand.u32 2147483647, %v121_v8 }
  0x32   :  { %v67_v11 = vadd.f32 1.0, %v123_v9  ;;  %v70_v13 = vmul.f32 -0.5, %v123_v9  ;;  %v73_v23 = vand.u32 2147483647, %v123_v9 }
  0x33   :  { %124 = vlog2.f32 %v58_v10  ;;  %v62_v16 = vadd.f32 1.0, %v61_v12  ;;  %vm65_vm0 = vcmp.lt.f32.partialorder %v64_v19, 0.0004427343 }
  0x34   :  { %126 = vlog2.f32 %v67_v11  ;;  %v71_v20 = vadd.f32 1.0, %v70_v13  ;;  %vm74_vm1 = vcmp.lt.f32.partialorder %v73_v23, 0.0004427343 }
  0x35   :  { %v63_v24 = vmul.f32 %v121_v8, %v62_v16 }
  0x36   :  { %v72_v27 = vmul.f32 %v123_v9, %v71_v20 }
  0x40   :  { %v125_v25 = vpop.eup %124 }
  0x41   :  { %v127_v28 = vpop.eup %126  ;;  %v60_v30 = vmul.f32 0.6931472, %v125_v25 }
  0x42   :  { %v69_v31 = vmul.f32 0.6931472, %v127_v28 }
  0x43   :  { %v66_v32 = vsel %vm65_vm0, %v63_v24, %v60_v30 }
  0x44   :  { %v75_v33 = vsel %vm74_vm1, %v72_v27, %v69_v31  ;;  %v76_v34 = vadd.f32 %v66_v32, %v48_v26 }
  0x45   :  { %v77_v35 = vadd.f32 %v75_v33, %v49_v29 }
  0x46   :  { %v78_v36 = vsub.f32 0.0, %v76_v34 }
  0x47   :  { %v79_v37 = vsub.f32 0.0, %v77_v35 }
  0x48   :  { %v80_v38 = vmul.f32 1.442695, %v78_v36 }
  0x49   :  { %v82_v39 = vmul.f32 1.442695, %v79_v37 }
  0x4a   :  { %128 = vpow2.f32 %v80_v38 }
  0x4b   :  { %130 = vpow2.f32 %v82_v39 }
  0x57   :  { %v129_v40 = vpop.eup %128 }
  0x58   :  { %v131_v41 = vpop.eup %130  ;;  %v84_v42 = vsub.f32 1.0, %v129_v40 }
  0x59   :  { %v85_v43 = vsub.f32 1.0, %v131_v41 }
  0x5a   :  { %v86_v44 = vmul.f32 %v84_v42, %v84_v42 }
  0x5b   :  { %v87_v45 = vmul.f32 %v85_v43, %v85_v43 }
  0x5c   :  { %v88_v46 = vmul.f32 %v86_v44, %v76_v34 }
  0x5d   :  { %v89_v47 = vmul.f32 %v87_v45, %v77_v35 }
  0x5f   :  { %v90_v48 = vadd.f32 %v89_v47, %v88_v46 }
  0x61   :  { %v91_v49 = vrot.slane %v90_v48, 4 }
  0x63   :  { %v92_v50 = vadd.f32 %v91_v49, %v90_v48 }
  0x65   :  { %v93_v51 = vrot.slane %v92_v50, 2 }
  0x67   :  { %v94_v52 = vadd.f32 %v93_v51, %v92_v50 }
  0x69   :  { %v95_v53 = vrot.slane %v94_v52, 1 }
  0x6b   :  { %v96_v54 = vadd.f32 %v95_v53, %v94_v52 }
  0x6d   :  { %98 = vst [vmem:[#allocation7] sm:$0x1] %v96_v54 }
  0x6e   :  { %183 = shalt.err (!%p180_p0)
}
  0x6f   :  { %108 = dma.vmem_to_hbm [thread:$0]  %s106_s1, 16, %s229_s2, [#allocation4]  }
  0x70   :  { %196 = dma.done.wait [#allocation4], 16  }
  0x71   :  { %197 = vsyncadd [#allocation4], 4294967280 }
  0x72   :  { %112 = vsyncpa [#allocation3], 1 }
  0x73   :  { %113 = vsyncpa [#allocation6], 1 }
  0x74   :  { %114 = vsyncpa [#allocation4], 1 }

</bundles_post_ra>
